<compile_context>
chip_gen: v6e
topology: v6e:2x2x1
jax: 0.10.0
libtpu: 0.0.40
codegen_flags: <defaults>
</compile_context>

<pallas_src>
import jax
import jax.numpy as jnp
from jax.experimental import pallas as pl
from jax.experimental.pallas import tpu as pltpu


def _deconv_bn_relu_kernel(x_ref, wp_ref, w00_ref, b_ref, o_ref):
    # x_ref : (H+1, W+1, Cin)   bf16 input for one image, zero pad at bottom/right
    #                           (supplies the x[m+1,*]/x[*,n+1] taps at the edge).
    # wp_ref: (4, Cin, 2*Cout)  bf16 packed weights (BN scale folded in):
    #           0: [W11|W12] @ x[m,  n  ]  -> even row (lo col | hi col)
    #           1: [W21|W22] @ x[m,  n  ]  -> odd  row (lo | hi)
    #           2: [W10|W20] @ x[m,  n+1]  -> (even.hi | odd.hi)
    #           3: [W01|W02] @ x[m+1,n  ]  -> (odd.lo  | odd.hi)
    # w00_ref: (Cin, Cout)      bf16, W00 @ x[m+1, n+1] -> odd.hi
    # b_ref : (1, 2*Cout)       f32 folded bias (duplicated for both column parities)
    # o_ref : (H, 2, W, 2*Cout) f32; [:,0]=even output rows, [:,1]=odd output rows,
    #                           last dim = (col parity, Cout) interleaved.
    H, _, W, twoC = o_ref.shape
    Cout = twoC // 2
    Cin = x_ref.shape[-1]
    M = H * W

    bias = b_ref[...]                                   # (1, 2*Cout)

    # Shifted views of the input (stay in VMEM; bf16 -> cheap relayouts).
    x00 = x_ref[0:H, 0:W, :].reshape(M, Cin)
    x01 = x_ref[0:H, 1:W + 1, :].reshape(M, Cin)

    # Even output rows: out[2m,2n] = x00@W11 ; out[2m,2n+1] = x00@W12 + x01@W10
    p0 = jnp.dot(x00, wp_ref[0], preferred_element_type=jnp.float32)   # (M, 2*Cout)
    p2 = jnp.dot(x01, wp_ref[2], preferred_element_type=jnp.float32)   # (M, 2*Cout)
    even = jnp.concatenate(
        [p0[:, :Cout], p0[:, Cout:] + p2[:, :Cout]], axis=-1)
    even = jnp.maximum(even + bias, 0.0)
    o_ref[:, 0, :, :] = even.reshape(H, W, twoC)

    # Odd output rows: out[2m+1,2n]   = x00@W21 + x10@W01
    #                  out[2m+1,2n+1] = x00@W22 + x01@W20 + x10@W02 + x11@W00
    x10 = x_ref[1:H + 1, 0:W, :].reshape(M, Cin)
    x11 = x_ref[1:H + 1, 1:W + 1, :].reshape(M, Cin)
    p1 = jnp.dot(x00, wp_ref[1], preferred_element_type=jnp.float32)   # (M, 2*Cout)
    p3 = jnp.dot(x10, wp_ref[3], preferred_element_type=jnp.float32)   # (M, 2*Cout)
    p4 = jnp.dot(x11, w00_ref[...], preferred_element_type=jnp.float32)  # (M, Cout)
    odd = jnp.concatenate(
        [p1[:, :Cout] + p3[:, :Cout],
         p1[:, Cout:] + p2[:, Cout:] + p3[:, Cout:] + p4], axis=-1)
    odd = jnp.maximum(odd + bias, 0.0)
    o_ref[:, 1, :, :] = odd.reshape(H, W, twoC)


def prepare_decov_params(w_pt, b_pt, gamma, beta, running_mean, running_var, eps=1e-5):
    """Fold BN into the ConvTranspose2d weights and pack them for the kernel.

    w_pt: (Cin, Cout, 3, 3) PyTorch ConvTranspose2d weight layout.
    Returns (w_pairs (4, Cin, 2*Cout) bf16, w_corner (Cin, Cout) bf16, bias2 (1, 2*Cout) f32).
    """
    scale = gamma / jnp.sqrt(running_var + eps)
    bias = beta + scale * (b_pt - running_mean)          # conv bias folded into BN bias
    w_eff = w_pt * scale[None, :, None, None]            # BN scale folded into weights

    def tap(kh, kw):                                     # (Cin, Cout)
        return w_eff[:, :, kh, kw]

    w_pairs = jnp.stack([
        jnp.concatenate([tap(1, 1), tap(1, 2)], axis=-1),   # x[m,   n  ] -> even row
        jnp.concatenate([tap(2, 1), tap(2, 2)], axis=-1),   # x[m,   n  ] -> odd  row
        jnp.concatenate([tap(1, 0), tap(2, 0)], axis=-1),   # x[m,   n+1] -> even.hi/odd.hi
        jnp.concatenate([tap(0, 1), tap(0, 2)], axis=-1),   # x[m+1, n  ] -> odd.lo /odd.hi
    ], axis=0).astype(jnp.bfloat16)
    w_corner = tap(0, 0).astype(jnp.bfloat16)                # x[m+1, n+1] -> odd.hi
    bias2 = jnp.concatenate([bias, bias])[None, :]           # same bias for both col parities
    return w_pairs, w_corner, bias2


@jax.jit
def decov_block(x_nchw, w_pairs, w_corner, bias2):
    """x_nchw: (N, 256, H, W) f32 -> (N, 128, 2H, 2W) f32."""
    N, Cin, H, W = x_nchw.shape
    Cout = w_corner.shape[-1]

    # NHWC (channels -> 128-lane axis), zero-pad 1 row/col at bottom/right, bf16 for MXU.
    x_nhwc = jnp.transpose(x_nchw, (0, 2, 3, 1))
    x_pad = jnp.pad(x_nhwc, ((0, 0), (0, 1), (0, 1), (0, 0))).astype(jnp.bfloat16)

    flops = 2 * N * 9 * H * W * Cin * Cout               # polyphase MAC count
    bytes_accessed = (x_pad.size * 2 + w_pairs.size * 2 + w_corner.size * 2
                      + bias2.size * 4 + N * H * 2 * W * 2 * Cout * 4)

    out5 = pl.pallas_call(
        _deconv_bn_relu_kernel,
        out_shape=jax.ShapeDtypeStruct((N, H, 2, W, 2 * Cout), jnp.float32),
        grid=(N,),
        in_specs=[
            pl.BlockSpec((None, H + 1, W + 1, Cin), lambda n: (n, 0, 0, 0)),
            pl.BlockSpec((4, Cin, 2 * Cout), lambda n: (0, 0, 0)),
            pl.BlockSpec((Cin, Cout), lambda n: (0, 0)),
            pl.BlockSpec((1, 2 * Cout), lambda n: (0, 0)),
        ],
        out_specs=pl.BlockSpec((None, H, 2, W, 2 * Cout),
                               lambda n: (n, 0, 0, 0, 0)),
        compiler_params=pltpu.CompilerParams(dimension_semantics=("parallel",)),
        cost_estimate=pl.CostEstimate(flops=flops, transcendentals=0,
                                      bytes_accessed=bytes_accessed),
    )(x_pad, w_pairs, w_corner, bias2)

    # (N, H, 2, W, 2*Cout) -> (N, 2H, 2W, Cout) is row-major compatible (free reshape).
    out_nhwc = out5.reshape(N, 2 * H, 2 * W, Cout)
    return jnp.transpose(out_nhwc, (0, 3, 1, 2))          # NCHW for the PyTorch interface


if __name__ == "__main__":
    CIN, COUT, K = 256, 128, 3
    N, H, W = 2, 8, 8

    key = jax.random.PRNGKey(0)
    kw_, kb_, kg_, kbe_, km_, kv_, kx_ = jax.random.split(key, 7)

    # ConvTranspose2d params (PyTorch weight layout: (Cin, Cout, kH, kW))
    W_pt = jax.random.normal(kw_, (CIN, COUT, K, K), jnp.float32) * 0.05
    b_pt = jax.random.normal(kb_, (COUT,), jnp.float32) * 0.05

    # BatchNorm2d params (inference form)
    gamma = 1.0 + 0.1 * jax.random.normal(kg_, (COUT,), jnp.float32)
    beta = 0.1 * jax.random.normal(kbe_, (COUT,), jnp.float32)
    running_mean = 0.1 * jax.random.normal(km_, (COUT,), jnp.float32)
    running_var = jax.nn.softplus(jax.random.normal(kv_, (COUT,), jnp.float32)) + 0.5
    eps = 1e-5

    x = jax.random.normal(kx_, (N, CIN, H, W), jnp.float32)

    w_pairs, w_corner, bias2 = prepare_decov_params(
        W_pt, b_pt, gamma, beta, running_mean, running_var, eps)

    out = jax.block_until_ready(decov_block(x, w_pairs, w_corner, bias2))
    assert out.shape == (N, COUT, 2 * H, 2 * W), out.shape

    # Reference: ConvTranspose2d == lhs-dilated conv with spatially flipped kernel,
    # then BN + ReLU.  Precision-matched: same BN-folded weights and inputs rounded
    # to bf16 (the kernel's MXU input precision), f32 accumulation.
    scale = gamma / jnp.sqrt(running_var + eps)
    bias = beta + scale * (b_pt - running_mean)
    W_eff = (W_pt * scale[None, :, None, None]).astype(jnp.bfloat16).astype(jnp.float32)
    x_bf = x.astype(jnp.bfloat16).astype(jnp.float32)

    x_nhwc_ref = jnp.transpose(x_bf, (0, 2, 3, 1))
    w_hwio = jnp.transpose(W_eff[:, :, ::-1, ::-1], (2, 3, 0, 1))   # flipped, (kh,kw,Cin,Cout)
    ref_conv = jax.lax.conv_general_dilated(
        x_nhwc_ref, w_hwio,
        window_strides=(1, 1), padding=((1, 2), (1, 2)), lhs_dilation=(2, 2),
        dimension_numbers=("NHWC", "HWIO", "NHWC"),
        precision=jax.lax.Precision.HIGHEST)
    ref = jnp.maximum(ref_conv + bias[None, None, None, :], 0.0)
    ref = jnp.transpose(ref, (0, 3, 1, 2))

    max_err = float(jnp.max(jnp.abs(out - ref)))
    assert jnp.allclose(out, ref, rtol=2e-3, atol=2e-3), max_err

    print("KERNEL_OK")
</pallas_src>

<mosaic_0001>
module attributes {stable_mosaic.version = 11 : i64} {
  func.func @_deconv_bn_relu_kernel(%arg0: i32, %arg1: memref<1x9x9x256xbf16, #tpu.memory_space<vmem>>, %arg2: memref<4x256x256xbf16, #tpu.memory_space<vmem>>, %arg3: memref<256x128xbf16, #tpu.memory_space<vmem>>, %arg4: memref<1x256xf32, #tpu.memory_space<vmem>>, %arg5: memref<1x8x2x8x256xf32, #tpu.memory_space<vmem>>) attributes {dimension_semantics = [#tpu.dimension_semantics<parallel>], iteration_bounds = array<i64: 2>, scalar_prefetch = 0 : i64, scratch_operands = 0 : i64, tpu.core_type = #tpu.core_type<tc>, window_params = [{transform_indices = @transform_0, window_bounds = array<i64: 1, 9, 9, 256>}, {pipeline_mode = #tpu.pipeline_mode<synchronous>, transform_indices = @transform_1, window_bounds = array<i64: 4, 256, 256>}, {pipeline_mode = #tpu.pipeline_mode<synchronous>, transform_indices = @transform_2, window_bounds = array<i64: 256, 128>}, {pipeline_mode = #tpu.pipeline_mode<synchronous>, transform_indices = @transform_3, window_bounds = array<i64: 1, 256>}, {transform_indices = @transform_4, window_bounds = array<i64: 1, 8, 2, 8, 256>}]} {
    %c0 = arith.constant 0 : index
    %c0_0 = arith.constant 0 : index
    %0 = vector.load %arg4[%c0, %c0_0] : memref<1x256xf32, #tpu.memory_space<vmem>>, vector<1x256xf32>
    %c0_1 = arith.constant 0 : index
    %c0_2 = arith.constant 0 : index
    %c0_3 = arith.constant 0 : index
    %c0_4 = arith.constant 0 : index
    %1 = vector.load %arg1[%c0_1, %c0_2, %c0_3, %c0_4] : memref<1x9x9x256xbf16, #tpu.memory_space<vmem>>, vector<1x8x8x256xbf16>
    %2 = vector.shape_cast %1 : vector<1x8x8x256xbf16> to vector<8x8x256xbf16>
    %3 = vector.shape_cast %2 : vector<8x8x256xbf16> to vector<64x256xbf16>
    %c0_5 = arith.constant 0 : index
    %c0_6 = arith.constant 0 : index
    %c1 = arith.constant 1 : index
    %c0_7 = arith.constant 0 : index
    %4 = vector.load %arg1[%c0_5, %c0_6, %c1, %c0_7] : memref<1x9x9x256xbf16, #tpu.memory_space<vmem>>, vector<1x8x8x256xbf16>
    %5 = vector.shape_cast %4 : vector<1x8x8x256xbf16> to vector<8x8x256xbf16>
    %6 = vector.shape_cast %5 : vector<8x8x256xbf16> to vector<64x256xbf16>
    %c0_8 = arith.constant 0 : index
    %c0_9 = arith.constant 0 : index
    %c0_10 = arith.constant 0 : index
    %7 = vector.load %arg2[%c0_8, %c0_9, %c0_10] : memref<4x256x256xbf16, #tpu.memory_space<vmem>>, vector<1x256x256xbf16>
    %8 = vector.shape_cast %7 : vector<1x256x256xbf16> to vector<256x256xbf16>
    %cst = arith.constant dense<0.000000e+00> : vector<64x256xf32>
    %9 = tpu.matmul %3, %8, %cst {dimension_numbers = #tpu.dot_dimension_numbers<[1], [0], [0], [1], [0, 0, 1, 1], [], []>} : vector<64x256xbf16>, vector<256x256xbf16>, vector<64x256xf32> -> vector<64x256xf32>
    %c2 = arith.constant 2 : index
    %c0_11 = arith.constant 0 : index
    %c0_12 = arith.constant 0 : index
    %10 = vector.load %arg2[%c2, %c0_11, %c0_12] : memref<4x256x256xbf16, #tpu.memory_space<vmem>>, vector<1x256x256xbf16>
    %11 = vector.shape_cast %10 : vector<1x256x256xbf16> to vector<256x256xbf16>
    %cst_13 = arith.constant dense<0.000000e+00> : vector<64x256xf32>
    %12 = tpu.matmul %6, %11, %cst_13 {dimension_numbers = #tpu.dot_dimension_numbers<[1], [0], [0], [1], [0, 0, 1, 1], [], []>} : vector<64x256xbf16>, vector<256x256xbf16>, vector<64x256xf32> -> vector<64x256xf32>
    %13 = vector.extract_strided_slice %9 {offsets = [0, 0], sizes = [64, 128], strides = [1, 1]} : vector<64x256xf32> to vector<64x128xf32>
    %14 = vector.extract_strided_slice %9 {offsets = [0, 128], sizes = [64, 128], strides = [1, 1]} : vector<64x256xf32> to vector<64x128xf32>
    %15 = vector.extract_strided_slice %12 {offsets = [0, 0], sizes = [64, 128], strides = [1, 1]} : vector<64x256xf32> to vector<64x128xf32>
    %16 = arith.addf %14, %15 : vector<64x128xf32>
    %17 = tpu.concatenate %13, %16 in 1 : vector<64x128xf32>, vector<64x128xf32> -> vector<64x256xf32>
    %18 = vector.broadcast %0 : vector<1x256xf32> to vector<64x256xf32>
    %19 = arith.addf %17, %18 : vector<64x256xf32>
    %cst_14 = arith.constant 0.000000e+00 : f32
    %20 = vector.broadcast %cst_14 : f32 to vector<64x256xf32>
    %21 = arith.maximumf %19, %20 : vector<64x256xf32>
    %22 = vector.shape_cast %21 : vector<64x256xf32> to vector<8x8x256xf32>
    %c0_15 = arith.constant 0 : index
    %c0_16 = arith.constant 0 : index
    %c0_17 = arith.constant 0 : index
    %c0_18 = arith.constant 0 : index
    %c0_19 = arith.constant 0 : index
    %23 = vector.load %arg5[%c0_15, %c0_16, %c0_17, %c0_18, %c0_19] : memref<1x8x2x8x256xf32, #tpu.memory_space<vmem>>, vector<1x8x1x8x256xf32>
    %24 = vector.shape_cast %23 : vector<1x8x1x8x256xf32> to vector<8x8x256xf32>
    %25 = vector.shape_cast %22 : vector<8x8x256xf32> to vector<1x8x1x8x256xf32>
    tpu.vector_store %arg5[%c0_15, %c0_16, %c0_17, %c0_18, %c0_19], %25 {strides = array<i32>} : memref<1x8x2x8x256xf32, #tpu.memory_space<vmem>>, vector<1x8x1x8x256xf32>,
    %c0_20 = arith.constant 0 : index
    %c1_21 = arith.constant 1 : index
    %c0_22 = arith.constant 0 : index
    %c0_23 = arith.constant 0 : index
    %26 = vector.load %arg1[%c0_20, %c1_21, %c0_22, %c0_23] : memref<1x9x9x256xbf16, #tpu.memory_space<vmem>>, vector<1x8x8x256xbf16>
    %27 = vector.shape_cast %26 : vector<1x8x8x256xbf16> to vector<8x8x256xbf16>
    %28 = vector.shape_cast %27 : vector<8x8x256xbf16> to vector<64x256xbf16>
    %c0_24 = arith.constant 0 : index
    %c1_25 = arith.constant 1 : index
    %c1_26 = arith.constant 1 : index
    %c0_27 = arith.constant 0 : index
    %29 = vector.load %arg1[%c0_24, %c1_25, %c1_26, %c0_27] : memref<1x9x9x256xbf16, #tpu.memory_space<vmem>>, vector<1x8x8x256xbf16>
    %30 = vector.shape_cast %29 : vector<1x8x8x256xbf16> to vector<8x8x256xbf16>
    %31 = vector.shape_cast %30 : vector<8x8x256xbf16> to vector<64x256xbf16>
    %c1_28 = arith.constant 1 : index
    %c0_29 = arith.constant 0 : index
    %c0_30 = arith.constant 0 : index
    %32 = vector.load %arg2[%c1_28, %c0_29, %c0_30] : memref<4x256x256xbf16, #tpu.memory_space<vmem>>, vector<1x256x256xbf16>
    %33 = vector.shape_cast %32 : vector<1x256x256xbf16> to vector<256x256xbf16>
    %cst_31 = arith.constant dense<0.000000e+00> : vector<64x256xf32>
    %34 = tpu.matmul %3, %33, %cst_31 {dimension_numbers = #tpu.dot_dimension_numbers<[1], [0], [0], [1], [0, 0, 1, 1], [], []>} : vector<64x256xbf16>, vector<256x256xbf16>, vector<64x256xf32> -> vector<64x256xf32>
    %c3 = arith.constant 3 : index
    %c0_32 = arith.constant 0 : index
    %c0_33 = arith.constant 0 : index
    %35 = vector.load %arg2[%c3, %c0_32, %c0_33] : memref<4x256x256xbf16, #tpu.memory_space<vmem>>, vector<1x256x256xbf16>
    %36 = vector.shape_cast %35 : vector<1x256x256xbf16> to vector<256x256xbf16>
    %cst_34 = arith.constant dense<0.000000e+00> : vector<64x256xf32>
    %37 = tpu.matmul %28, %36, %cst_34 {dimension_numbers = #tpu.dot_dimension_numbers<[1], [0], [0], [1], [0, 0, 1, 1], [], []>} : vector<64x256xbf16>, vector<256x256xbf16>, vector<64x256xf32> -> vector<64x256xf32>
    %c0_35 = arith.constant 0 : index
    %c0_36 = arith.constant 0 : index
    %38 = vector.load %arg3[%c0_35, %c0_36] : memref<256x128xbf16, #tpu.memory_space<vmem>>, vector<256x128xbf16>
    %cst_37 = arith.constant dense<0.000000e+00> : vector<64x128xf32>
    %39 = tpu.matmul %31, %38, %cst_37 {dimension_numbers = #tpu.dot_dimension_numbers<[1], [0], [0], [1], [0, 0, 1, 1], [], []>} : vector<64x256xbf16>, vector<256x128xbf16>, vector<64x128xf32> -> vector<64x128xf32>
    %40 = vector.extract_strided_slice %34 {offsets = [0, 0], sizes = [64, 128], strides = [1, 1]} : vector<64x256xf32> to vector<64x128xf32>
    %41 = vector.extract_strided_slice %37 {offsets = [0, 0], sizes = [64, 128], strides = [1, 1]} : vector<64x256xf32> to vector<64x128xf32>
    %42 = arith.addf %40, %41 : vector<64x128xf32>
    %43 = vector.extract_strided_slice %34 {offsets = [0, 128], sizes = [64, 128], strides = [1, 1]} : vector<64x256xf32> to vector<64x128xf32>
    %44 = vector.extract_strided_slice %12 {offsets = [0, 128], sizes = [64, 128], strides = [1, 1]} : vector<64x256xf32> to vector<64x128xf32>
    %45 = arith.addf %43, %44 : vector<64x128xf32>
    %46 = vector.extract_strided_slice %37 {offsets = [0, 128], sizes = [64, 128], strides = [1, 1]} : vector<64x256xf32> to vector<64x128xf32>
    %47 = arith.addf %45, %46 : vector<64x128xf32>
    %48 = arith.addf %47, %39 : vector<64x128xf32>
    %49 = tpu.concatenate %42, %48 in 1 : vector<64x128xf32>, vector<64x128xf32> -> vector<64x256xf32>
    %50 = vector.broadcast %0 : vector<1x256xf32> to vector<64x256xf32>
    %51 = arith.addf %49, %50 : vector<64x256xf32>
    %cst_38 = arith.constant 0.000000e+00 : f32
    %52 = vector.broadcast %cst_38 : f32 to vector<64x256xf32>
    %53 = arith.maximumf %51, %52 : vector<64x256xf32>
    %54 = vector.shape_cast %53 : vector<64x256xf32> to vector<8x8x256xf32>
    %c0_39 = arith.constant 0 : index
    %c0_40 = arith.constant 0 : index
    %c1_41 = arith.constant 1 : index
    %c0_42 = arith.constant 0 : index
    %c0_43 = arith.constant 0 : index
    %55 = vector.load %arg5[%c0_39, %c0_40, %c1_41, %c0_42, %c0_43] : memref<1x8x2x8x256xf32, #tpu.memory_space<vmem>>, vector<1x8x1x8x256xf32>
    %56 = vector.shape_cast %55 : vector<1x8x1x8x256xf32> to vector<8x8x256xf32>
    %57 = vector.shape_cast %54 : vector<8x8x256xf32> to vector<1x8x1x8x256xf32>
    tpu.vector_store %arg5[%c0_39, %c0_40, %c1_41, %c0_42, %c0_43], %57 {strides = array<i32>} : memref<1x8x2x8x256xf32, #tpu.memory_space<vmem>>, vector<1x8x1x8x256xf32>,
    return
  }
  func.func @transform_0(%arg0: i32) -> (i32, i32, i32, i32) {
    %c0_i32 = arith.constant 0 : i32
    %c0_i32_0 = arith.constant 0 : i32
    %c0_i32_1 = arith.constant 0 : i32
    %c0_i32_2 = arith.constant 0 : i32
    return %arg0, %c0_i32, %c0_i32_0, %c0_i32_1 : i32, i32, i32, i32
  }
  func.func @transform_1(%arg0: i32) -> (i32, i32, i32) {
    %c0_i32 = arith.constant 0 : i32
    %c0_i32_0 = arith.constant 0 : i32
    %c0_i32_1 = arith.constant 0 : i32
    %c0_i32_2 = arith.constant 0 : i32
    return %c0_i32, %c0_i32_0, %c0_i32_1 : i32, i32, i32
  }
  func.func @transform_2(%arg0: i32) -> (i32, i32) {
    %c0_i32 = arith.constant 0 : i32
    %c0_i32_0 = arith.constant 0 : i32
    %c0_i32_1 = arith.constant 0 : i32
    return %c0_i32, %c0_i32_0 : i32, i32
  }
  func.func @transform_3(%arg0: i32) -> (i32, i32) {
    %c0_i32 = arith.constant 0 : i32
    %c0_i32_0 = arith.constant 0 : i32
    %c0_i32_1 = arith.constant 0 : i32
    return %c0_i32, %c0_i32_0 : i32, i32
  }
  func.func @transform_4(%arg0: i32) -> (i32, i32, i32, i32, i32) {
    %c0_i32 = arith.constant 0 : i32
    %c0_i32_0 = arith.constant 0 : i32
    %c0_i32_1 = arith.constant 0 : i32
    %c0_i32_2 = arith.constant 0 : i32
    %c0_i32_3 = arith.constant 0 : i32
    return %arg0, %c0_i32, %c0_i32_0, %c0_i32_1, %c0_i32_2 : i32, i32, i32, i32, i32
  }
}

</mosaic_0001>

<bundles_post_ra>
// kernel: decov_block.1
= control target key start
LH: loop header
LB: loop body
LE: loop exit
PB: predicated region body
PF: predicated region fallthrough
CT: control target
= control target key end

     0   :  { %9 = vsyncpa [#allocation3], 0  ;;  %s2679_s15 = smov 0   ;;  %s3100_s0 = inlined_call_operand.vmem [shape: bf16[2,9,9,256], index: 0, kind: input, shape index: {}]   ;;  %s3101_s1 = inlined_call_operand.hbm [shape: bf16[4,256,256], index: 1, kind: input, shape index: {}]   ;;  %s3102_s2 = inlined_call_operand.vmem [shape: bf16[256,128], index: 2, kind: input, shape index: {}]   ;;  %s3103_s3 = inlined_call_operand.vmem [shape: f32[1,256], index: 3, kind: input, shape index: {}]   ;;  %s3104_s4 = inlined_call_operand.vmem [shape: f32[2,8,2,8,256], index: 4, kind: output, shape index: {}]  }
   0x1 LB: > { %s2685_s16 = sadd.s32 4294967295, %s2649_s15   ;;  %p2092_p0 = scmp.ge.s32.totalorder %s2649_s15, 1  ;;  %s2649_s15 = sphi %s2679_s15, %s15_s15  }
   0x2   : > { %p135_p1 = scmp.lt.s32.totalorder %s2649_s15, 3  ;;  %s2651_s17 = smov [#allocation2]  }
   0x3   : > { %s147_s18 = sshll.u32 %s2651_s17, 4  ;;  %p2376_p3 = scmp.eq.s32.totalorder %s2685_s16, 0  ;;  %s148_s18 = int_to_ptr.vmem [resolvable:$true] %s147_s18 }
   0x4   : > { %p2689_p2 = pnand %p2092_p0, %p135_p1  ;;  %s2624_s20 = scalar_lea.vmem %s148_s18, 16384 }
   0x5   : > { %p2625_p7 = scmp.ne.s32.totalorder %s148_s18, %s2624_s20  ;;  %p2632_p10 = scmp.lt.s32.totalorder %s148_s18, %s148_s18 }
   0x6   : > { %p2372_p4 = pneg %p2689_p2  ;;  %p2633_p11 = scmp.lt.s32.totalorder %s2624_s20, %s2624_s20 }
   0x8   : > { %p2373_p5 = pnand %p2376_p3, %p2372_p4  ;;  %p2634_p12 = por %p2633_p11, %p2632_p10 }
   0xa   : > { %p2615_p6 = pneg %p2373_p5 }
   0xc   : > { %p2627_p8 = pnand %p2625_p7, %p2615_p6 }
   0xe   : > { %p2628_p9 = pneg %p2627_p8 }
  0x10   : > { %p2635_p13 = pnand %p2634_p12, %p2628_p9 }
  0x12   : > { %2638 = shalt.err (!%p2635_p13)
}
  0x13   : > { %s2652_s21 = smov 128   ;;  %s2653_s22 = smov 8  }
  0x14   : > { %2375 = dma.hbm_to_vmem [thread:$0]  (!%p2373_p5), %s3101_s1, 16384, %s148_s18, [#allocation3], %s2652_s21, %s2652_s21, %s2653_s22  }
  0x15   : > { %177 = sbr.rel (%p2689_p2) target bundleno = 405 (0x195), region = 36 }
  0x1a   : > { %2644 = dma.done.wait (%p2376_p3), [#allocation3], 16384  }
  0x1b   : > { %2646 = vsyncadd (%p2376_p3), [#allocation3], 4294950912  ;;  %v2389_v0 = vld [vmem:[#allocation2 + $0x74] ss:$8 sps:$4 sm:$0xff]   ;;  %v2393_v2 = vld [vmem:[#allocation2 + $0x70] ss:$8 sps:$4 sm:$0xff]  }
  0x1c   : > { %v2391_v1 = vld [vmem:[#allocation2 + $0x274] ss:$8 sps:$4 sm:$0xff]   ;;  %578 = vmatprep.subr.bf16.mxu0 %v2389_v0  ;;  %v2394_v3 = vld [vmem:[#allocation2 + $0x270] ss:$8 sps:$4 sm:$0xff]   ;;  %v2395_v4 = vld [vmem:[#allocation2 + $0x64] ss:$8 sps:$4 sm:$0xff]  }
  0x1d   : > { %876 = vmatprep.subr.bf16.mxu1 %v2391_v1  ;;  %579 = vmatpush1.bf16.msra.mxu0 %v2393_v2  ;;  %v2397_v5 = vld [vmem:[#allocation2 + $0x264] ss:$8 sps:$4 sm:$0xff]   ;;  %v2399_v6 = vld [vmem:[#allocation2 + $0x60] ss:$8 sps:$4 sm:$0xff]   ;;  %v2401_v8 = vld [vmem:[#allocation2 + $0x54] ss:$8 sps:$4 sm:$0xff]  }
  0x1e   : > { %877 = vmatpush1.bf16.msra.mxu1 %v2394_v3  ;;  %580 = vmatprep.subr.bf16.mxu0 %v2395_v4  ;;  %v2400_v7 = vld [vmem:[#allocation2 + $0x260] ss:$8 sps:$4 sm:$0xff]   ;;  %v2403_v9 = vld [vmem:[#allocation2 + $0x254] ss:$8 sps:$4 sm:$0xff]   ;;  %v2405_v10 = vld [vmem:[#allocation2 + $0x50] ss:$8 sps:$4 sm:$0xff]  }
  0x1f   : > { %878 = vmatprep.subr.bf16.mxu1 %v2397_v5  ;;  %v2406_v11 = vld [vmem:[#allocation2 + $0x250] ss:$8 sps:$4 sm:$0xff]   ;;  %v2407_v12 = vld [vmem:[#allocation2 + $0x44] ss:$8 sps:$4 sm:$0xff]   ;;  %v2411_v14 = vld [vmem:[#allocation2 + $0x40] ss:$8 sps:$4 sm:$0xff]  }
  0x20   : > { %v2409_v13 = vld [vmem:[#allocation2 + $0x244] ss:$8 sps:$4 sm:$0xff]   ;;  %v2412_v15 = vld [vmem:[#allocation2 + $0x240] ss:$8 sps:$4 sm:$0xff]   ;;  %v2413_v16 = vld [vmem:[#allocation2 + $0x34] ss:$8 sps:$4 sm:$0xff]  }
  0x21   : > { %581 = vmatpush1.bf16.msra.mxu0 %v2399_v6  ;;  %v2415_v17 = vld [vmem:[#allocation2 + $0x234] ss:$8 sps:$4 sm:$0xff]   ;;  %v2417_v18 = vld [vmem:[#allocation2 + $0x30] ss:$8 sps:$4 sm:$0xff]   ;;  %v2419_v20 = vld [vmem:[#allocation2 + $0x24] ss:$8 sps:$4 sm:$0xff]  }
  0x22   : > { %879 = vmatpush1.bf16.msra.mxu1 %v2400_v7  ;;  %582 = vmatprep.subr.bf16.mxu0 %v2401_v8  ;;  %v2418_v19 = vld [vmem:[#allocation2 + $0x230] ss:$8 sps:$4 sm:$0xff]   ;;  %v2421_v21 = vld [vmem:[#allocation2 + $0x224] ss:$8 sps:$4 sm:$0xff]   ;;  %v2423_v22 = vld [vmem:[#allocation2 + $0x20] ss:$8 sps:$4 sm:$0xff]  }
  0x23   : > { %880 = vmatprep.subr.bf16.mxu1 %v2403_v9  ;;  %v2424_v23 = vld [vmem:[#allocation2 + $0x220] ss:$8 sps:$4 sm:$0xff]   ;;  %v2425_v24 = vld [vmem:[#allocation2 + $0x14] ss:$8 sps:$4 sm:$0xff]   ;;  %v2429_v26 = vld [vmem:[#allocation2 + $0x10] ss:$8 sps:$4 sm:$0xff]  }
  0x24   : > { %v2427_v25 = vld [vmem:[#allocation2 + $0x214] ss:$8 sps:$4 sm:$0xff]   ;;  %v2430_v27 = vld [vmem:[#allocation2 + $0x210] ss:$8 sps:$4 sm:$0xff]   ;;  %v2431_v28 = vld [vmem:[#allocation2 + $0x4] ss:$8 sps:$4 sm:$0xff]  }
  0x25   : > { %583 = vmatpush1.bf16.msra.mxu0 %v2405_v10  ;;  %v2433_v29 = vld [vmem:[#allocation2 + $0x204] ss:$8 sps:$4 sm:$0xff]   ;;  %v2435_v30 = vld [vmem:[#allocation2] ss:$8 sps:$4 sm:$0xff]   ;;  %p203_p0 = scmp.lt.s32.totalorder %s2685_s16, 1 }
  0x26   : > { %881 = vmatpush1.bf16.msra.mxu1 %v2406_v11  ;;  %584 = vmatprep.subr.bf16.mxu0 %v2407_v12  ;;  %v2436_v31 = vld [vmem:[#allocation2 + $0x200] ss:$8 sps:$4 sm:$0xff]   ;;  %v2437_v32 = vld [vmem:[#allocation2 + $0xf4] ss:$8 sps:$4 sm:$0xff]   ;;  %v2441_v34 = vld [vmem:[#allocation2 + $0xf0] ss:$8 sps:$4 sm:$0xff]  }
  0x27   : > { %882 = vmatprep.subr.bf16.mxu1 %v2409_v13  ;;  %v2439_v33 = vld [vmem:[#allocation2 + $0x2f4] ss:$8 sps:$4 sm:$0xff]   ;;  %v2442_v35 = vld [vmem:[#allocation2 + $0x2f0] ss:$8 sps:$4 sm:$0xff]   ;;  %s3109_s16 = smov (!%p203_p0, %s2685_s16), 1 }
  0x28   : > { %v2443_v36 = vld [vmem:[#allocation2 + $0xe4] ss:$8 sps:$4 sm:$0xff]   ;;  %v2447_v38 = vld [vmem:[#allocation2 + $0xe0] ss:$8 sps:$4 sm:$0xff]   ;;  %s2367_s25 = smul.u32 144, %s3109_s16  ;;  %s2310_s13 = sshll.u32 %s3109_s16, 8 }
  0x29   : > { %585 = vmatpush1.bf16.msra.mxu0 %v2411_v14  ;;  %v2445_v37 = vld [vmem:[#allocation2 + $0x2e4] ss:$8 sps:$4 sm:$0xff]   ;;  %v2448_v39 = vld [vmem:[#allocation2 + $0x2e0] ss:$8 sps:$4 sm:$0xff]   ;;  %v2449_v40 = vld [vmem:[#allocation2 + $0xd4] ss:$8 sps:$4 sm:$0xff]   ;;  %s2990_s18 = scalar_lea.vmem %s3104_s4, %s2310_s13 }
  0x2a   : > { %883 = vmatpush1.bf16.msra.mxu1 %v2412_v15  ;;  %586 = vmatprep.subr.bf16.mxu0 %v2413_v16  ;;  %v2451_v41 = vld [vmem:[#allocation2 + $0x2d4] ss:$8 sps:$4 sm:$0xff]   ;;  %v2453_v42 = vld [vmem:[#allocation2 + $0xd0] ss:$8 sps:$4 sm:$0xff]   ;;  %s2715_s28 = scalar_lea.vmem %s3100_s0, %s2367_s25  ;;  %v2455_v44 = vld [vmem:[#allocation2 + $0xc4] ss:$8 sps:$4 sm:$0xff]  }
  0x2b   : > { %884 = vmatprep.subr.bf16.mxu1 %v2415_v17  ;;  %v2454_v43 = vld [vmem:[#allocation2 + $0x2d0] ss:$8 sps:$4 sm:$0xff]   ;;  %vm231_vm0 = vsmask.f32 3328  ;;  %v2457_v45 = vld [vmem:[#allocation2 + $0x2c4] ss:$8 sps:$4 sm:$0xff]  }
  0x2c   : > { %vm232_vm1 = vsmask.f32 7440  ;;  %v2459_v46 = vld [vmem:[#allocation2 + $0xc0] ss:$8 sps:$4 sm:$0xff]   ;;  %v2461_v49 = vld [vmem:[#allocation2 + $0xb4] ss:$8 sps:$4 sm:$0xff]  }
  0x2d   : > { %587 = vmatpush1.bf16.msra.mxu0 %v2417_v18  ;;  %v2460_v47 = vld [vmem:[#allocation2 + $0x2c0] ss:$8 sps:$4 sm:$0xff]   ;;  %v2721_v50 = vld [vmem:[%s2715_s28 + $0x10] sm:$0xff]  ;;  %v224_v52 = vld [vmem:[%s2715_s28 + $0x18] sm:$0x11] }
  0x2e   : > { %885 = vmatpush1.bf16.msra.mxu1 %v2418_v19  ;;  %588 = vmatprep.subr.bf16.mxu0 %v2419_v20  ;;  %v2718_v48 = vld [vmem:[%s2715_s28] sm:$0xff]  ;;  %v223_v51 = vld [vmem:[%s2715_s28 + $0x8] sm:$0x11]  ;;  %v249_v57 = vshrl.u32 %v2721_v50, 16  ;;  %v2463_v58 = vld [vmem:[#allocation2 + $0x2b4] ss:$8 sps:$4 sm:$0xff]  }
  0x2f   : > { %886 = vmatprep.subr.bf16.mxu1 %v2421_v21  ;;  %v235_v53 = vshrl.u32 %v2718_v48, 16  ;;  %v2728_v54 = vcombine.high %v2718_v48, %v2721_v50  ;;  %v238_v55 = vshll.u32 %v2718_v48, 16  ;;  %v244_v56 = vshll.u32 %v223_v51, 16  ;;  %v2465_v0 = vld [vmem:[#allocation2 + $0xb0] ss:$8 sps:$4 sm:$0xff]   ;;  %vm2736_vm2 = vmor %vm231_vm0, %vm232_vm1 }
  0x30   : > { %v252_v60 = vshll.u32 %v2721_v50, 16  ;;  %v258_v61 = vshll.u32 %v224_v52, 16  ;;  %v251_v63 = vrot.slane %v249_v57, 4  ;;  %v2466_v3 = vld [vmem:[#allocation2 + $0x2b0] ss:$8 sps:$4 sm:$0xff]  }
  0x31   : > { %589 = vmatpush1.bf16.msra.mxu0 %v2423_v22  ;;  %v237_v59 = vrot.slane %v235_v53, 4  ;;  %610 = vmatprep.mubr.bf16.mxu0 %v2728_v54  ;;  %v240_v62 = vrot.slane %v238_v55, 5  ;;  %v2467_v4 = vld [vmem:[#allocation2 + $0xa4] ss:$8 sps:$4 sm:$0xff]   ;;  %v246_v6 = vrot.slane %v244_v56, 5 }
  0x32   : > { %887 = vmatpush1.bf16.msra.mxu1 %v2424_v23  ;;  %590 = vmatprep.subr.bf16.mxu0 %v2425_v24  ;;  %v254_v2 = vrot.slane %v252_v60, 5  ;;  %v2469_v7 = vld [vmem:[#allocation2 + $0x2a4] ss:$8 sps:$4 sm:$0xff]   ;;  %v260_v9 = vrot.slane %v258_v61, 5  ;;  %v2471_v11 = vld [vmem:[#allocation2 + $0xa0] ss:$8 sps:$4 sm:$0xff]  }
  0x33   : > { %888 = vmatprep.subr.bf16.mxu1 %v2427_v25  ;;  %v241_v5 = vor.u32 %v240_v62, %v237_v59  ;;  %v2472_v13 = vld [vmem:[#allocation2 + $0x2a0] ss:$8 sps:$4 sm:$0xff]   ;;  %v2473_v14 = vld [vmem:[#allocation2 + $0x94] ss:$8 sps:$4 sm:$0xff]   ;;  %v2477_v19 = vld [vmem:[#allocation2 + $0x90] ss:$8 sps:$4 sm:$0xff]  }
  0x34   : > { %v255_v8 = vor.u32 %v254_v2, %v251_v63  ;;  %v2475_v16 = vld [vmem:[#allocation2 + $0x294] ss:$8 sps:$4 sm:$0xff]   ;;  %v2478_v20 = vld [vmem:[#allocation2 + $0x290] ss:$8 sps:$4 sm:$0xff]   ;;  %v2479_v21 = vld [vmem:[#allocation2 + $0x84] ss:$8 sps:$4 sm:$0xff]  }
  0x35   : > { %591 = vmatpush1.bf16.msra.mxu0 %v2429_v26  ;;  %v242_v10 = vrot.slane %v241_v5, 4  ;;  %v2481_v22 = vld [vmem:[#allocation2 + $0x284] ss:$8 sps:$4 sm:$0xff]   ;;  %v2483_v23 = vld [vmem:[#allocation2 + $0x80] ss:$8 sps:$4 sm:$0xff]  }
  0x36   : > { %889 = vmatpush1.bf16.msra.mxu1 %v2430_v27  ;;  %592 = vmatprep.subr.bf16.mxu0 %v2431_v28  ;;  %v2740_v12 = vrot.slane %v255_v8, 4  ;;  %v2484_v24 = vld [vmem:[#allocation2 + $0x280] ss:$8 sps:$4 sm:$0xff]   ;;  %v2489_v25 = vld [vmem:[#allocation2 + $0x174] ss:$8 sps:$4 sm:$0xff]   ;;  %v2749_v28 = vcombine.low %v2718_v48, %v2721_v50 }
  0x37   : > { %890 = vmatprep.subr.bf16.mxu1 %v2433_v29  ;;  %v247_v15 = vsel %vm2736_vm2, %v242_v10, %v246_v6  ;;  %v2492_v26 = vld [vmem:[#allocation2 + $0x374] ss:$8 sps:$4 sm:$0xff]   ;;  %v2487_v29 = vld [vmem:[#allocation2 + $0x170] ss:$8 sps:$4 sm:$0xff]   ;;  %v2507_v52 = vld [vmem:[#allocation2 + $0x144] ss:$8 sps:$4 sm:$0xff]  }
  0x38   : > { %v261_v17 = vsel %vm2736_vm2, %v2740_v12, %v260_v9  ;;  %v2505_v63 = vld [vmem:[#allocation2 + $0x140] ss:$8 sps:$4 sm:$0xff]   ;;  %v2513_v2 = vld [vmem:[#allocation2 + $0x134] ss:$8 sps:$4 sm:$0xff]  }
  0x39   : > { %593 = vmatpush1.bf16.msra.mxu0 %v2435_v30  ;;  %v2141_v18 = vcombine.high %v247_v15, %v261_v17  ;;  %v2140_v27 = vcombine.low %v247_v15, %v261_v17  ;;  %v2490_v30 = vld [vmem:[#allocation2 + $0x370] ss:$8 sps:$4 sm:$0xff]   ;;  %v2779_v5 = vld [vmem:[%s2715_s28 + $0x40] sm:$0xff]  ;;  %v2516_v6 = vld [vmem:[#allocation2 + $0x334] ss:$8 sps:$4 sm:$0xff]  }
  0x3a   : > { %891 = vmatpush1.bf16.msra.mxu1 %v2436_v31  ;;  %594 = vmatprep.subr.bf16.mxu0 %v2437_v32  ;;  %v2495_v31 = vld [vmem:[#allocation2 + $0x164] ss:$8 sps:$4 sm:$0xff]   ;;  %v291_v8 = vshrl.u32 %v2779_v5, 16  ;;  %v294_v9 = vshll.u32 %v2779_v5, 16  ;;  %v2511_v17 = vld [vmem:[#allocation2 + $0x130] ss:$8 sps:$4 sm:$0xff]  }
  0x3b   : > { %892 = vmatprep.subr.bf16.mxu1 %v2439_v33  ;;  %908 = vmatprep.mubr.bf16.mxu1 %v2141_v18  ;;  %v2498_v32 = vld [vmem:[#allocation2 + $0x364] ss:$8 sps:$4 sm:$0xff]   ;;  %v2493_v33 = vld [vmem:[#allocation2 + $0x160] ss:$8 sps:$4 sm:$0xff]   ;;  %v2514_v18 = vld [vmem:[#allocation2 + $0x330] ss:$8 sps:$4 sm:$0xff]  }
  0x3c   : > { %v227_v15 = vld [vmem:[%s2715_s28 + $0x48] sm:$0x11] }
  0x3d   : > { %595 = vmatpush2.bf16.msra.mxu0 %v2441_v34  ;;  %v2496_v34 = vld [vmem:[#allocation2 + $0x360] ss:$8 sps:$4 sm:$0xff]  }
  0x3e   : > { %893 = vmatpush2.bf16.msra.mxu1 %v2442_v35  ;;  %596 = vmatprep.subr.bf16.mxu0 %v2443_v36  ;;  %v2501_v35 = vld [vmem:[#allocation2 + $0x154] ss:$8 sps:$4 sm:$0xff]  }
  0x3f   : > { %894 = vmatprep.subr.bf16.mxu1 %v2445_v37  ;;  %v2504_v36 = vld [vmem:[#allocation2 + $0x354] ss:$8 sps:$4 sm:$0xff]   ;;  %v2753_v37 = vld [vmem:[%s2715_s28 + $0x20] sm:$0xff] }
  0x41   : > { %597 = vmatpush2.bf16.msra.mxu0 %v2447_v38  ;;  %v2756_v38 = vld [vmem:[%s2715_s28 + $0x30] sm:$0xff] }
  0x42   : > { %895 = vmatpush2.bf16.msra.mxu1 %v2448_v39  ;;  %598 = vmatprep.subr.bf16.mxu0 %v2449_v40  ;;  %v225_v39 = vld [vmem:[%s2715_s28 + $0x28] sm:$0x11]  ;;  %v2499_v40 = vld [vmem:[#allocation2 + $0x150] ss:$8 sps:$4 sm:$0xff]   ;;  %v2770_v51 = vcombine.low %v2753_v37, %v2756_v38 }
  0x43   : > { %896 = vmatprep.subr.bf16.mxu1 %v2451_v41  ;;  %v263_v41 = vshrl.u32 %v2753_v37, 16  ;;  %v272_v48 = vshll.u32 %v225_v39, 16  ;;  %v2525_v39 = vld [vmem:[#allocation2 + $0x114] ss:$8 sps:$4 sm:$0xff]  }
  0x45   : > { %599 = vmatpush2.bf16.msra.mxu0 %v2453_v42  ;;  %v266_v42 = vshll.u32 %v2753_v37, 16  ;;  %v265_v53 = vrot.slane %v263_v41, 4  ;;  %v274_v60 = vrot.slane %v272_v48, 5  ;;  %v2528_v41 = vld [vmem:[#allocation2 + $0x314] ss:$8 sps:$4 sm:$0xff]  }
  0x46   : > { %897 = vmatpush2.bf16.msra.mxu1 %v2454_v43  ;;  %600 = vmatprep.subr.bf16.mxu0 %v2455_v44  ;;  %v277_v43 = vshrl.u32 %v2756_v38, 16  ;;  %v280_v44 = vshll.u32 %v2756_v38, 16 }
  0x47   : > { %898 = vmatprep.subr.bf16.mxu1 %v2457_v45  ;;  %v226_v45 = vld [vmem:[%s2715_s28 + $0x38] sm:$0x11]  ;;  %v268_v55 = vrot.slane %v266_v42, 5 }
  0x48   : > { %v279_v56 = vrot.slane %v277_v43, 4  ;;  %v282_v57 = vrot.slane %v280_v44, 5  ;;  %v2811_v44 = vld [vmem:[%s2715_s28 + $0x60] sm:$0xff] }
  0x49   : > { %601 = vmatpush2.bf16.msra.mxu0 %v2459_v46  ;;  %v2502_v46 = vld [vmem:[#allocation2 + $0x350] ss:$8 sps:$4 sm:$0xff]   ;;  %v269_v59 = vor.u32 %v268_v55, %v265_v53  ;;  %v322_v48 = vshll.u32 %v2811_v44, 16  ;;  %v229_v53 = vld [vmem:[%s2715_s28 + $0x68] sm:$0x11] }
  0x4a   : > { %899 = vmatpush2.bf16.msra.mxu1 %v2460_v47  ;;  %602 = vmatprep.subr.bf16.mxu0 %v2461_v49  ;;  %v2766_v47 = vcombine.high %v2753_v37, %v2756_v38  ;;  %v286_v49 = vshll.u32 %v226_v45, 16  ;;  %v283_v61 = vor.u32 %v282_v57, %v279_v56  ;;  %v2814_v45 = vld [vmem:[%s2715_s28 + $0x70] sm:$0xff] }
  0x4b   : > { %900 = vmatprep.subr.bf16.mxu1 %v2463_v58  ;;  %v2510_v58 = vld [vmem:[#allocation2 + $0x344] ss:$8 sps:$4 sm:$0xff]   ;;  %v2829_v57 = vcombine.high %v2811_v44, %v2814_v45 }
  0x4c   : > { %v288_v62 = vrot.slane %v286_v49, 5  ;;  %v333_v49 = vshrl.u32 %v2814_v45, 16 }
  0x4d   : > { %603 = vmatpush2.bf16.msra.mxu0 %v2465_v0  ;;  %v2508_v0 = vld [vmem:[#allocation2 + $0x340] ss:$8 sps:$4 sm:$0xff]  }
  0x4e   : > { %901 = vmatpush2.bf16.msra.mxu1 %v2466_v3  ;;  %604 = vmatprep.subr.bf16.mxu0 %v2467_v4  ;;  %v2774_v3 = vrot.slane %v269_v59, 4  ;;  %v2776_v4 = vrot.slane %v283_v61, 4  ;;  %v328_v59 = vshll.u32 %v229_v53, 16  ;;  %v2526_v61 = vld [vmem:[#allocation2 + $0x310] ss:$8 sps:$4 sm:$0xff]  }
  0x4f   : > { %902 = vmatprep.subr.bf16.mxu1 %v2469_v7  ;;  %v2782_v7 = vld [vmem:[%s2715_s28 + $0x50] sm:$0xff]  ;;  %v2560_v53 = vld [vmem:[#allocation2 + $0x3c0] ss:$8 sps:$4 sm:$0xff]  }
  0x50   : > { %v275_v10 = vsel %vm2736_vm2, %v2774_v3, %v274_v60  ;;  %v2523_v60 = vld [vmem:[#allocation2 + $0x110] ss:$8 sps:$4 sm:$0xff]  }
  0x51   : > { %605 = vmatpush2.bf16.msra.mxu0 %v2471_v11  ;;  %v289_v11 = vsel %vm2736_vm2, %v2776_v4, %v288_v62 }
  0x52   : > { %903 = vmatpush2.bf16.msra.mxu1 %v2472_v13  ;;  %606 = vmatprep.subr.bf16.mxu0 %v2473_v14  ;;  %v305_v13 = vshrl.u32 %v2782_v7, 16  ;;  %v308_v14 = vshll.u32 %v2782_v7, 16 }
  0x53   : > { %904 = vmatprep.subr.bf16.mxu1 %v2475_v16  ;;  %v228_v16 = vld [vmem:[%s2715_s28 + $0x58] sm:$0x11] }
  0x55   : > { %607 = vmatpush2.bf16.msra.mxu0 %v2477_v19  ;;  %v2143_v19 = vcombine.high %v275_v10, %v289_v11 }
  0x56   : > { %905 = vmatpush2.bf16.msra.mxu1 %v2478_v20  ;;  %608 = vmatprep.subr.bf16.mxu0 %v2479_v21  ;;  %v2142_v20 = vcombine.low %v275_v10, %v289_v11  ;;  %v2798_v21 = vcombine.high %v2779_v5, %v2782_v7  ;;  %v2531_v10 = vld [vmem:[#allocation2 + $0x104] ss:$8 sps:$4 sm:$0xff]  }
  0x57   : > { %906 = vmatprep.subr.bf16.mxu1 %v2481_v22  ;;  %v293_v22 = vrot.slane %v291_v8, 4  ;;  %v2534_v11 = vld [vmem:[#allocation2 + $0x304] ss:$8 sps:$4 sm:$0xff]  }
  0x59   : > { %609 = vmatpush2.bf16.msra.mxu0 %v2483_v23  ;;  %v296_v23 = vrot.slane %v294_v9, 5 }
  0x5a   : > { %907 = vmatpush2.bf16.msra.mxu1 %v2484_v24  ;;  %1338 = vmatprep.subr.bf16.mxu0 %v2489_v25  ;;  %v300_v24 = vshll.u32 %v227_v15, 16  ;;  %v307_v25 = vrot.slane %v305_v13, 4  ;;  %v2834_v15 = vcombine.low %v2811_v44, %v2814_v45 }
  0x5b   : > { %1644 = vmatprep.subr.bf16.mxu1 %v2492_v26  ;;  %v310_v26 = vrot.slane %v308_v14, 5  ;;  %v330_v14 = vrot.slane %v328_v59, 5  ;;  %v2188_v59 = vld [vmem:[%s2715_s28 + $0x18] sm:$0x11] }
  0x5c   : > { %611 = vmatmul.mubr.bf16.vlgmr.msra.gmra.mxu0 %v2749_v28 }
  0x5d   : > { %909 = vmatmul.mubr.bf16.vlgmr.msra.gmra.mxu1 %v2140_v27  ;;  %1339 = vmatpush1.bf16.msra.mxu0 %v2487_v29  ;;  %v2519_v27 = vld [vmem:[#allocation2 + $0x124] ss:$8 sps:$4 sm:$0xff]  }
  0x5e   : > { %1645 = vmatpush1.bf16.msra.mxu1 %v2490_v30  ;;  %1340 = vmatprep.subr.bf16.mxu0 %v2495_v31  ;;  %v2522_v29 = vld [vmem:[#allocation2 + $0x324] ss:$8 sps:$4 sm:$0xff]   ;;  %v314_v30 = vshll.u32 %v228_v16, 16  ;;  %v2802_v31 = vcombine.low %v2779_v5, %v2782_v7 }
  0x5f   : > { %1646 = vmatprep.subr.bf16.mxu1 %v2498_v32  ;;  %620 = vmatprep.mubr.bf16.mxu0 %v2766_v47  ;;  %v2517_v32 = vld [vmem:[#allocation2 + $0x120] ss:$8 sps:$4 sm:$0xff]  }
  0x60   : > { %918 = vmatprep.mubr.bf16.mxu1 %v2143_v19 }
  0x61   : > { %1341 = vmatpush1.bf16.msra.mxu0 %v2493_v33  ;;  %v2520_v33 = vld [vmem:[#allocation2 + $0x320] ss:$8 sps:$4 sm:$0xff]  }
  0x62   : > { %1647 = vmatpush1.bf16.msra.mxu1 %v2496_v34  ;;  %1342 = vmatprep.subr.bf16.mxu0 %v2501_v35  ;;  %v297_v34 = vor.u32 %v296_v23, %v293_v22  ;;  %v302_v35 = vrot.slane %v300_v24, 5  ;;  %v2537_v23 = vld [vmem:[#allocation2 + $0x1f4] ss:$8 sps:$4 sm:$0xff]  }
  0x63   : > { %1648 = vmatprep.subr.bf16.mxu1 %v2504_v36  ;;  %v311_v36 = vor.u32 %v310_v26, %v307_v25  ;;  %v2540_v24 = vld [vmem:[#allocation2 + $0x3f4] ss:$8 sps:$4 sm:$0xff]   ;;  %v2535_v26 = vld [vmem:[#allocation2 + $0x1f0] ss:$8 sps:$4 sm:$0xff]  }
  0x64   : > { %621 = vmatmul.mubr.bf16.gmra.mxu0 %v2770_v51  ;;  %v2806_v42 = vrot.slane %v297_v34, 4  ;;  %v2548_v34 = vld [vmem:[#allocation2 + $0x3e4] ss:$8 sps:$4 sm:$0xff]  }
  0x65   : > { %1343 = vmatpush1.bf16.msra.mxu0 %v2499_v40  ;;  %630 = vmatprep.mubr.bf16.mxu0 %v2798_v21  ;;  %v316_v40 = vrot.slane %v314_v30, 5  ;;  %v2808_v43 = vrot.slane %v311_v36, 4  ;;  %v2229_v36 = vcombine.high %v2721_v50, %v2753_v37 }
  0x66   : > { %1649 = vmatpush1.bf16.msra.mxu1 %v2502_v46  ;;  %1344 = vmatprep.subr.bf16.mxu0 %v2507_v52  ;;  %v319_v46 = vshrl.u32 %v2811_v44, 16  ;;  %v336_v52 = vshll.u32 %v2814_v45, 16  ;;  %v303_v55 = vsel %vm2736_vm2, %v2806_v42, %v302_v35  ;;  %v2543_v35 = vld [vmem:[#allocation2 + $0x1e0] ss:$8 sps:$4 sm:$0xff]  }
  0x67   : > { %1650 = vmatprep.subr.bf16.mxu1 %v2510_v58  ;;  %919 = vmatmul.mubr.bf16.gmra.mxu1 %v2142_v20  ;;  %v317_v56 = vsel %vm2736_vm2, %v2808_v43, %v316_v40  ;;  %v230_v58 = vld [vmem:[%s2715_s28 + $0x78] sm:$0x11]  ;;  %v2532_v20 = vld [vmem:[#allocation2 + $0x300] ss:$8 sps:$4 sm:$0xff]  }
  0x68   : > { %v2145_v62 = vcombine.high %v303_v55, %v317_v56  ;;  %v338_v8 = vrot.slane %v336_v52, 5  ;;  %v342_v9 = vshll.u32 %v230_v58, 16  ;;  %v2551_v40 = vld [vmem:[#allocation2 + $0x1d4] ss:$8 sps:$4 sm:$0xff]   ;;  %v2557_v52 = vld [vmem:[#allocation2 + $0x1c0] ss:$8 sps:$4 sm:$0xff]  }
  0x69   : > { %1345 = vmatpush1.bf16.msra.mxu0 %v2505_v63  ;;  %v2144_v63 = vcombine.low %v303_v55, %v317_v56  ;;  %v2565_v55 = vld [vmem:[#allocation2 + $0x1b4] ss:$8 sps:$4 sm:$0xff]   ;;  %v2563_v58 = vld [vmem:[#allocation2 + $0x1b0] ss:$8 sps:$4 sm:$0xff]  }
  0x6a   : > { %1651 = vmatpush1.bf16.msra.mxu1 %v2508_v0  ;;  %1346 = vmatprep.subr.bf16.mxu0 %v2513_v2  ;;  %v321_v0 = vrot.slane %v319_v46, 4  ;;  %v324_v2 = vrot.slane %v322_v48, 5  ;;  %v2552_v46 = vld [vmem:[#allocation2 + $0x3d0] ss:$8 sps:$4 sm:$0xff]   ;;  %v2559_v48 = vld [vmem:[#allocation2 + $0x1c4] ss:$8 sps:$4 sm:$0xff]  }
  0x6b   : > { %1652 = vmatprep.subr.bf16.mxu1 %v2516_v6  ;;  %v335_v6 = vrot.slane %v333_v49, 4  ;;  %928 = vmatprep.mubr.bf16.mxu1 %v2145_v62  ;;  %v2562_v49 = vld [vmem:[#allocation2 + $0x3c4] ss:$8 sps:$4 sm:$0xff]   ;;  %v2568_v56 = vld [vmem:[#allocation2 + $0x3b4] ss:$8 sps:$4 sm:$0xff]  }
  0x6c   : > { %631 = vmatmul.mubr.bf16.gmra.mxu0 %v2802_v31  ;;  %v325_v13 = vor.u32 %v324_v2, %v321_v0  ;;  %v2573_v62 = vld [vmem:[#allocation2 + $0x1a4] ss:$8 sps:$4 sm:$0xff]  }
  0x6d   : > { %1347 = vmatpush1.bf16.msra.mxu0 %v2511_v17  ;;  %640 = vmatprep.mubr.bf16.mxu0 %v2829_v57  ;;  %v339_v16 = vor.u32 %v338_v8, %v335_v6  ;;  %v344_v17 = vrot.slane %v342_v9, 5  ;;  %v2576_v2 = vld [vmem:[#allocation2 + $0x3a4] ss:$8 sps:$4 sm:$0xff]   ;;  %v2190_v6 = vld [vmem:[%s2715_s28 + $0x38] sm:$0x11] }
  0x6e   : > { %1653 = vmatpush1.bf16.msra.mxu1 %v2514_v18  ;;  %1348 = vmatprep.subr.bf16.mxu0 %v2519_v27  ;;  %v2529_v18 = vld [vmem:[#allocation2 + $0x100] ss:$8 sps:$4 sm:$0xff]   ;;  %v2837_v19 = vrot.slane %v325_v13, 4 }
  0x6f   : > { %1654 = vmatprep.subr.bf16.mxu1 %v2522_v29  ;;  %929 = vmatmul.mubr.bf16.gmra.mxu1 %v2144_v63  ;;  %v2840_v22 = vrot.slane %v339_v16, 4  ;;  %v2538_v29 = vld [vmem:[#allocation2 + $0x3f0] ss:$8 sps:$4 sm:$0xff]   ;;  %v1043_v63 = vshll.u32 %v2188_v59, 16  ;;  %v2191_v8 = vld [vmem:[%s2715_s28 + $0x48] sm:$0x11] }
  0x70   : > { %v331_v25 = vsel %vm2736_vm2, %v2837_v19, %v330_v14  ;;  %v1085_v13 = vshll.u32 %v2191_v8, 16  ;;  %v2571_v14 = vld [vmem:[#allocation2 + $0x1a0] ss:$8 sps:$4 sm:$0xff]  }
  0x71   : > { %1349 = vmatpush1.bf16.msra.mxu0 %v2517_v32  ;;  %v345_v27 = vsel %vm2736_vm2, %v2840_v22, %v344_v17  ;;  %v1045_v9 = vrot.slane %v1043_v63, 5  ;;  %v2574_v16 = vld [vmem:[#allocation2 + $0x3a0] ss:$8 sps:$4 sm:$0xff]  }
  0x72   : > { %1655 = vmatpush1.bf16.msra.mxu1 %v2520_v33  ;;  %1350 = vmatprep.subr.bf16.mxu0 %v2525_v39  ;;  %v2147_v30 = vcombine.high %v331_v25, %v345_v27  ;;  %v2146_v32 = vcombine.low %v331_v25, %v345_v27  ;;  %v2545_v33 = vld [vmem:[#allocation2 + $0x1e4] ss:$8 sps:$4 sm:$0xff]   ;;  %v2546_v39 = vld [vmem:[#allocation2 + $0x3e0] ss:$8 sps:$4 sm:$0xff]   ;;  %v2582_v25 = vld [vmem:[#allocation2 + $0x394] ss:$8 sps:$4 sm:$0xff]  }
  0x73   : > { %1656 = vmatprep.subr.bf16.mxu1 %v2528_v41  ;;  %v2549_v41 = vld [vmem:[#allocation2 + $0x1d0] ss:$8 sps:$4 sm:$0xff]   ;;  %v2858_v17 = vsel %vm2736_vm2, %v2740_v12, %v1045_v9  ;;  %v2609_v8 = vld [vmem:[%s3102_s2 + $0x48] sm:$0xff]  }
  0x74   : > { %641 = vmatmul.mubr.bf16.gmra.mxu0 %v2834_v15  ;;  %938 = vmatprep.mubr.bf16.mxu1 %v2147_v30  ;;  %v2577_v30 = vld [vmem:[#allocation2 + $0x190] ss:$8 sps:$4 sm:$0xff]  }
  0x75   : > { %1351 = vmatpush1.bf16.msra.mxu0 %v2523_v60  ;;  %1370 = vmatprep.mubr.bf16.mxu0 %v2728_v54  ;;  %v2554_v54 = vld [vmem:[#allocation2 + $0x3d4] ss:$8 sps:$4 sm:$0xff]   ;;  %v2189_v60 = vld [vmem:[%s2715_s28 + $0x28] sm:$0x11] }
  0x76   : > { %1657 = vmatpush1.bf16.msra.mxu1 %v2526_v61  ;;  %1352 = vmatprep.subr.bf16.mxu0 %v2531_v10  ;;  %v2566_v61 = vld [vmem:[#allocation2 + $0x3b0] ss:$8 sps:$4 sm:$0xff]   ;;  %v1057_v0 = vshll.u32 %v2189_v60, 16 }
  0x77   : > { %1658 = vmatprep.subr.bf16.mxu1 %v2534_v11  ;;  %939 = vmatmul.mubr.bf16.gmra.mxu1 %v2146_v32  ;;  %v1071_v11 = vshll.u32 %v2190_v6, 16  ;;  %v2580_v32 = vld [vmem:[#allocation2 + $0x390] ss:$8 sps:$4 sm:$0xff]  }
  0x78   : > { %1676 = vmatprep.mubr.bf16.mxu1 %v2229_v36  ;;  %v1059_v10 = vrot.slane %v1057_v0, 5  ;;  %v2586_v36 = vld [vmem:[#allocation2 + $0x380] ss:$8 sps:$4 sm:$0xff]   ;;  %v2604_v60 = vld [vmem:[%s3102_s2 + $0x18] sm:$0xff]   ;;  %v2606_v6 = vld [vmem:[%s3102_s2 + $0x10] sm:$0xff]  }
  0x79   : > { %1353 = vmatpush1.bf16.msra.mxu0 %v2529_v18  ;;  %v2194_v0 = vld [vmem:[%s2715_s28 + $0x78] sm:$0x11] }
  0x7a   : > { %1659 = vmatpush1.bf16.msra.mxu1 %v2532_v20  ;;  %1354 = vmatprep.subr.bf16.mxu0 %v2537_v23  ;;  %v2863_v18 = vsel %vm2736_vm2, %v2774_v3, %v1059_v10  ;;  %v1073_v20 = vrot.slane %v1071_v11, 5  ;;  %v1087_v23 = vrot.slane %v1085_v13, 5  ;;  %v1127_v9 = vshll.u32 %v2194_v0, 16 }
  0x7b   : > { %1660 = vmatprep.subr.bf16.mxu1 %v2540_v24  ;;  %v2579_v24 = vld [vmem:[#allocation2 + $0x194] ss:$8 sps:$4 sm:$0xff]   ;;  %v2269_v27 = vcombine.high %v2858_v17, %v2863_v18 }
  0x7c   : > { %v2872_v12 = vsel %vm2736_vm2, %v2776_v4, %v1073_v20  ;;  %v2877_v3 = vsel %vm2736_vm2, %v2806_v42, %v1087_v23  ;;  %v2588_v4 = vld [vmem:[#allocation2 + $0x384] ss:$8 sps:$4 sm:$0xff]   ;;  %v2591_v42 = vld [vmem:[%s3102_s2 + $0x78] sm:$0xff]  }
  0x7d   : > { %1355 = vmatpush2.bf16.msra.mxu0 %v2535_v26  ;;  %v2268_v26 = vcombine.low %v2858_v17, %v2863_v18  ;;  %v214_v17 = vld [vmem:[%s3103_s3] sm:$0x3] }
  0x7e   : > { %1661 = vmatpush2.bf16.msra.mxu1 %v2538_v29  ;;  %1356 = vmatprep.subr.bf16.mxu0 %v2545_v33  ;;  %v2271_v29 = vcombine.high %v2872_v12, %v2877_v3  ;;  %v2270_v33 = vcombine.low %v2872_v12, %v2877_v3 }
  0x7f   : > { %1662 = vmatprep.subr.bf16.mxu1 %v2548_v34  ;;  %v2585_v34 = vld [vmem:[#allocation2 + $0x184] ss:$8 sps:$4 sm:$0xff]  }
  0x81   : > { %1357 = vmatpush2.bf16.msra.mxu0 %v2543_v35  ;;  %v2583_v35 = vld [vmem:[#allocation2 + $0x180] ss:$8 sps:$4 sm:$0xff]  }
  0x82   : > { %1663 = vmatpush2.bf16.msra.mxu1 %v2546_v39  ;;  %1358 = vmatprep.subr.bf16.mxu0 %v2551_v40  ;;  %v2228_v39 = vcombine.low %v2721_v50, %v2753_v37  ;;  %v2592_v40 = vld [vmem:[%s3102_s2 + $0x38] sm:$0xff]   ;;  %v2594_v50 = vld [vmem:[%s3102_s2 + $0x30] sm:$0xff]   ;;  %v2597_v37 = vld [vmem:[%s3102_s2 + $0x68] sm:$0xff]  }
  0x83   : > { %1664 = vmatprep.subr.bf16.mxu1 %v2554_v54  ;;  %v2593_v54 = vld [vmem:[%s3102_s2 + $0x70] sm:$0xff]  }
  0x85   : > { %1359 = vmatpush2.bf16.msra.mxu0 %v2549_v41  ;;  %v2231_v41 = vcombine.high %v2756_v38, %v2779_v5 }
  0x86   : > { %1665 = vmatpush2.bf16.msra.mxu1 %v2552_v46  ;;  %1360 = vmatprep.subr.bf16.mxu0 %v2559_v48  ;;  %v2598_v46 = vld [vmem:[%s3102_s2 + $0x28] sm:$0xff]   ;;  %v2599_v48 = vld [vmem:[%s3102_s2 + $0x60] sm:$0xff]  }
  0x87   : > { %1666 = vmatprep.subr.bf16.mxu1 %v2562_v49  ;;  %v2192_v49 = vld [vmem:[%s2715_s28 + $0x58] sm:$0x11] }
  0x89   : > { %1361 = vmatpush2.bf16.msra.mxu0 %v2557_v52  ;;  %v2193_v52 = vld [vmem:[%s2715_s28 + $0x68] sm:$0x11] }
  0x8a   : > { %1667 = vmatpush2.bf16.msra.mxu1 %v2560_v53  ;;  %1362 = vmatprep.subr.bf16.mxu0 %v2565_v55  ;;  %v2603_v53 = vld [vmem:[%s3102_s2 + $0x58] sm:$0xff]   ;;  %v1113_v59 = vshll.u32 %v2193_v52, 16 }
  0x8b   : > { %1668 = vmatprep.subr.bf16.mxu1 %v2568_v56 }
  0x8d   : > { %1363 = vmatpush2.bf16.msra.mxu0 %v2563_v58  ;;  %v1099_v58 = vshll.u32 %v2192_v49, 16 }
  0x8e   : > { %1669 = vmatpush2.bf16.msra.mxu1 %v2566_v61  ;;  %1364 = vmatprep.subr.bf16.mxu0 %v2573_v62  ;;  %v2605_v61 = vld [vmem:[%s3102_s2 + $0x50] sm:$0xff]  }
  0x8f   : > { %1670 = vmatprep.subr.bf16.mxu1 %v2576_v2  ;;  %v1115_v2 = vrot.slane %v1113_v59, 5 }
  0x91   : > { %1365 = vmatpush2.bf16.msra.mxu0 %v2571_v14  ;;  %v1116_v14 = vsel %vm2736_vm2, %v2837_v19, %v1115_v2  ;;  %v2612_v19 = vld [vmem:[%s3102_s2] sm:$0xff]  }
  0x92   : > { %1671 = vmatpush2.bf16.msra.mxu1 %v2574_v16  ;;  %1366 = vmatprep.subr.bf16.mxu0 %v2579_v24  ;;  %v2610_v16 = vld [vmem:[%s3102_s2 + $0x8] sm:$0xff]  }
  0x93   : > { %1672 = vmatprep.subr.bf16.mxu1 %v2582_v25 }
  0x95   : > { %1367 = vmatpush2.bf16.msra.mxu0 %v2577_v30 }
  0x96   : > { %1673 = vmatpush2.bf16.msra.mxu1 %v2580_v32  ;;  %1368 = vmatprep.subr.bf16.mxu0 %v2585_v34 }
  0x97   : > { %1674 = vmatprep.subr.bf16.mxu1 %v2588_v4 }
  0x99   : > { %1369 = vmatpush2.bf16.msra.mxu0 %v2583_v35 }
  0x9a   : > { %1675 = vmatpush2.bf16.msra.mxu1 %v2586_v36  ;;  %2311 = vmatprep.subr.bf16.mxu0 %v2591_v42 }
  0x9b   : > { %2351 = vmatprep.subr.bf16.mxu1 %v2591_v42 }
  0x9c   : > { %1371 = vmatmul.mubr.bf16.vlgmr.msra.gmra.mxu0 %v2749_v28  ;;  %v2230_v28 = vcombine.low %v2756_v38, %v2779_v5  ;;  %v2600_v38 = vld [vmem:[%s3102_s2 + $0x20] sm:$0xff]  }
  0x9d   : > { %1677 = vmatmul.mubr.bf16.vlgmr.msra.gmra.mxu1 %v2228_v39  ;;  %2312 = vmatpush3.bf16.msra.mxu0 %v2592_v40  ;;  %v2187_v5 = vld [vmem:[%s2715_s28 + $0x80] sm:$0xff] }
  0x9e   : > { %2359 = vmatpush3.bf16.msra.mxu1 %v2592_v40  ;;  %2313 = vmatprep.subr.bf16.mxu0 %v2593_v54  ;;  %v1132_v55 = vshrl.u32 %v2187_v5, 16  ;;  %v1135_v56 = vshll.u32 %v2187_v5, 16  ;;  %v2235_v63 = vcombine.high %v2814_v45, %v2187_v5 }
  0x9f   : > { %2352 = vmatprep.subr.bf16.mxu1 %v2593_v54  ;;  %1380 = vmatprep.mubr.bf16.mxu0 %v2766_v47  ;;  %v2233_v47 = vcombine.high %v2782_v7, %v2811_v44 }
  0xa0   : > { %1686 = vmatprep.mubr.bf16.mxu1 %v2231_v41  ;;  %v1134_v62 = vrot.slane %v1132_v55, 4 }
  0xa1   : > { %2314 = vmatpush3.bf16.msra.mxu0 %v2594_v50 }
  0xa2   : > { %2360 = vmatpush3.bf16.msra.mxu1 %v2594_v50  ;;  %2315 = vmatprep.subr.bf16.mxu0 %v2597_v37 }
  0xa3   : > { %2353 = vmatprep.subr.bf16.mxu1 %v2597_v37 }
  0xa4   : > { %1381 = vmatmul.mubr.bf16.gmra.mxu0 %v2770_v51  ;;  %v2232_v51 = vcombine.low %v2782_v7, %v2811_v44  ;;  %v2195_v7 = vld [vmem:[%s2715_s28 + $0x88] sm:$0x11]  ;;  %v1101_v44 = vrot.slane %v1099_v58, 5 }
  0xa5   : > { %1687 = vmatmul.mubr.bf16.gmra.mxu1 %v2230_v28  ;;  %2316 = vmatpush3.bf16.msra.mxu0 %v2598_v46  ;;  %v1141_v11 = vshll.u32 %v2195_v7, 16 }
  0xa6   : > { %2361 = vmatpush3.bf16.msra.mxu1 %v2598_v46  ;;  %2317 = vmatprep.subr.bf16.mxu0 %v2599_v48  ;;  %v1102_v13 = vsel %vm2736_vm2, %v2808_v43, %v1101_v44 }
  0xa7   : > { %2354 = vmatprep.subr.bf16.mxu1 %v2599_v48  ;;  %1390 = vmatprep.mubr.bf16.mxu0 %v2798_v21  ;;  %v1137_v21 = vrot.slane %v1135_v56, 5  ;;  %v1143_v23 = vrot.slane %v1141_v11, 5  ;;  %v2273_v43 = vcombine.high %v1102_v13, %v1116_v14 }
  0xa8   : > { %1696 = vmatprep.mubr.bf16.mxu1 %v2233_v47 }
  0xa9   : > { %2318 = vmatpush3.bf16.msra.mxu0 %v2600_v38  ;;  %v1138_v10 = vor.u32 %v1137_v21, %v1134_v62 }
  0xaa   : > { %2362 = vmatpush3.bf16.msra.mxu1 %v2600_v38  ;;  %2319 = vmatprep.subr.bf16.mxu0 %v2603_v53 }
  0xab   : > { %2355 = vmatprep.subr.bf16.mxu1 %v2603_v53  ;;  %v1139_v20 = vrot.slane %v1138_v10, 4 }
  0xac   : > { %1391 = vmatmul.mubr.bf16.gmra.mxu0 %v2802_v31  ;;  %v2234_v31 = vcombine.low %v2814_v45, %v2187_v5  ;;  %v2611_v45 = vld [vmem:[%s3102_s2 + $0x40] sm:$0xff]  }
  0xad   : > { %1697 = vmatmul.mubr.bf16.gmra.mxu1 %v2232_v51  ;;  %2320 = vmatpush3.bf16.msra.mxu0 %v2604_v60  ;;  %v1144_v25 = vsel %vm2736_vm2, %v1139_v20, %v1143_v23 }
  0xae   : > { %2363 = vmatpush3.bf16.msra.mxu1 %v2604_v60  ;;  %2321 = vmatprep.subr.bf16.mxu0 %v2605_v61 }
  0xaf   : > { %2356 = vmatprep.subr.bf16.mxu1 %v2605_v61  ;;  %1400 = vmatprep.mubr.bf16.mxu0 %v2829_v57  ;;  %v1129_v57 = vrot.slane %v1127_v9, 5 }
  0xb0   : > { %1706 = vmatprep.mubr.bf16.mxu1 %v2235_v63 }
  0xb1   : > { %2322 = vmatpush3.bf16.msra.mxu0 %v2606_v6  ;;  %v1130_v24 = vsel %vm2736_vm2, %v2840_v22, %v1129_v57  ;;  %v958_v22 = vlaneseq }
  0xb2   : > { %2364 = vmatpush3.bf16.msra.mxu1 %v2606_v6  ;;  %2323 = vmatprep.subr.bf16.mxu0 %v2609_v8  ;;  %v2275_v30 = vcombine.high %v1130_v24, %v1144_v25  ;;  %v2274_v1 = vcombine.low %v1130_v24, %v1144_v25 }
  0xb3   : > { %2357 = vmatprep.subr.bf16.mxu1 %v2609_v8 }
  0xb4   : > { %1401 = vmatmul.mubr.bf16.gmra.mxu0 %v2834_v15  ;;  %v2272_v15 = vcombine.low %v1102_v13, %v1116_v14 }
  0xb5   : > { %1707 = vmatmul.mubr.bf16.gmra.mxu1 %v2234_v31  ;;  %2324 = vmatpush3.bf16.msra.mxu0 %v2610_v16 }
  0xb6   : > { %2365 = vmatpush3.bf16.msra.mxu1 %v2610_v16  ;;  %2325 = vmatprep.subr.bf16.mxu0 %v2611_v45 }
  0xb7   : > { %2358 = vmatprep.subr.bf16.mxu1 %v2611_v45  ;;  %1909 = vmatprep.mubr.bf16.mxu0 %v2269_v27  ;;  %v959_v27 = vshrl.u32 %v958_v22, 7 }
  0xb8   : > { %1925 = vmatprep.mubr.bf16.mxu1 %v2273_v43 }
  0xb9   : > { %2326 = vmatpush3.bf16.msra.mxu0 %v2612_v19  ;;  %v960_v32 = vsub.s32 0, %v959_v27 }
  0xba   : > { %2366 = vmatpush3.bf16.msra.mxu1 %v2612_v19 }
  0xbb   : > { %v2981_v18 = vrot.slane %v214_v17, %v960_v32 }
  0xbc   : > { %1910 = vmatmul.mubr.bf16.vlgmr.msra.gmra.mxu0 %v2268_v26  ;;  %v964_v26 = vsub.s32 1, %v959_v27 }
  0xbd   : > { %1926 = vmatmul.mubr.bf16.vlgmr.msra.gmra.mxu1 %v2272_v15  ;;  %1917 = vmatprep.mubr.bf16.mxu0 %v2271_v29 }
  0xbe   : > { %1933 = vmatprep.mubr.bf16.mxu1 %v2275_v30  ;;  %v2985_v35 = vrot.slane %v214_v17, %v964_v26 }
  0xc4   : > { %1918 = vmatmul.mubr.bf16.gmra.mxu0 %v2270_v33 }
  0xc5   : > { %1934 = vmatmul.mubr.bf16.gmra.mxu1 %v2274_v1 }
 0x11c   : > { %v612_v34 = vpop.f32.mrf.mxu0 }
 0x11d   : > { %v910_v29 = vpop.f32.mrf.mxu1  ;;  %v968_v4 = vadd.f32 %v2981_v18, %v612_v34 }
 0x11e   : > { %v614_v12 = vpop.f32.mrf.mxu0 }
 0x11f   : > { %v2992_v3 = vpop.f32.mrf.mxu1  ;;  %v984_v33 = vmax.f32 %v968_v4, 0.0  ;;  %v949_v36 = vadd.f32 %v910_v29, %v614_v12 }
 0x120   : > { %v616_v42 = vpop.f32.mrf.mxu0 }
 0x121   : > { %1000 = vst [vmem:[%s2990_s18] sm:$0xff] %v984_v33  ;;  %v969_v39 = vadd.f32 %v2985_v35, %v949_v36  ;;  %v970_v40 = vadd.f32 %v2981_v18, %v616_v42  ;;  %v914_v54 = vpop.f32.mrf.mxu1 }
 0x122   : > { %v618_v41 = vpop.f32.mrf.mxu0 }
 0x123   : > { %v985_v50 = vmax.f32 %v969_v39, 0.0  ;;  %v986_v37 = vmax.f32 %v970_v40, 0.0  ;;  %v950_v28 = vadd.f32 %v914_v54, %v618_v41  ;;  %v3004_v55 = vpop.f32.mrf.mxu1 }
 0x124   : > { %v622_v46 = vpop.f32.mrf.mxu0 }
 0x125   : > { %1001 = vst [vmem:[%s2990_s18 + $0x8] sm:$0xff] %v985_v50  ;;  %1002 = vst [vmem:[%s2990_s18 + $0x20] sm:$0xff] %v986_v37  ;;  %v971_v48 = vadd.f32 %v2985_v35, %v950_v28  ;;  %v972_v47 = vadd.f32 %v2981_v18, %v622_v46 }
 0x126   : > { %v624_v38 = vpop.f32.mrf.mxu0 }
 0x127   : > { %v987_v5 = vmax.f32 %v971_v48, 0.0  ;;  %v988_v49 = vmax.f32 %v972_v47, 0.0  ;;  %v920_v58 = vpop.f32.mrf.mxu1 }
 0x128   : > { %v626_v52 = vpop.f32.mrf.mxu0  ;;  %v951_v60 = vadd.f32 %v920_v58, %v624_v38 }
 0x129   : > { %1003 = vst [vmem:[%s2990_s18 + $0x28] sm:$0xff] %v987_v5  ;;  %1004 = vst [vmem:[%s2990_s18 + $0x40] sm:$0xff] %v988_v49  ;;  %v974_v53 = vadd.f32 %v2981_v18, %v626_v52  ;;  %v3008_v62 = vpop.f32.mrf.mxu1 }
 0x12a   : > { %v628_v56 = vpop.f32.mrf.mxu0  ;;  %v973_v63 = vadd.f32 %v2985_v35, %v951_v60 }
 0x12b   : > { %v990_v51 = vmax.f32 %v974_v53, 0.0  ;;  %v924_v7 = vpop.f32.mrf.mxu1 }
 0x12c   : > { %v632_v59 = vpop.f32.mrf.mxu0  ;;  %v989_v2 = vmax.f32 %v973_v63, 0.0  ;;  %v952_v6 = vadd.f32 %v924_v7, %v628_v56 }
 0x12d   : > { %1006 = vst [vmem:[%s2990_s18 + $0x60] sm:$0xff] %v990_v51  ;;  %v976_v61 = vadd.f32 %v2981_v18, %v632_v59  ;;  %v3013_v9 = vpop.f32.mrf.mxu1 }
 0x12e   : > { %v634_v21 = vpop.f32.mrf.mxu0  ;;  %1005 = vst [vmem:[%s2990_s18 + $0x48] sm:$0xff] %v989_v2  ;;  %v975_v11 = vadd.f32 %v2985_v35, %v952_v6 }
 0x12f   : > { %v992_v0 = vmax.f32 %v976_v61, 0.0  ;;  %v930_v13 = vpop.f32.mrf.mxu1 }
 0x130   : > { %v636_v44 = vpop.f32.mrf.mxu0  ;;  %v991_v16 = vmax.f32 %v975_v11, 0.0  ;;  %v953_v45 = vadd.f32 %v930_v13, %v634_v21 }
 0x131   : > { %1008 = vst [vmem:[%s2990_s18 + $0x80] sm:$0xff] %v992_v0  ;;  %v978_v8 = vadd.f32 %v2981_v18, %v636_v44  ;;  %v3019_v20 = vpop.f32.mrf.mxu1 }
 0x132   : > { %v638_v10 = vpop.f32.mrf.mxu0  ;;  %1007 = vst [vmem:[%s2990_s18 + $0x68] sm:$0xff] %v991_v16  ;;  %v977_v43 = vadd.f32 %v2985_v35, %v953_v45 }
 0x133   : > { %v994_v31 = vmax.f32 %v978_v8, 0.0  ;;  %v934_v24 = vpop.f32.mrf.mxu1 }
 0x134   : > { %v642_v14 = vpop.f32.mrf.mxu0  ;;  %v993_v15 = vmax.f32 %v977_v43, 0.0  ;;  %v954_v30 = vadd.f32 %v934_v24, %v638_v10 }
 0x135   : > { %1010 = vst [vmem:[%s2990_s18 + $0xa0] sm:$0xff] %v994_v31  ;;  %v980_v57 = vadd.f32 %v2981_v18, %v642_v14  ;;  %v3025_v22 = vpop.f32.mrf.mxu1 }
 0x136   : > { %v644_v23 = vpop.f32.mrf.mxu0  ;;  %1009 = vst [vmem:[%s2990_s18 + $0x88] sm:$0xff] %v993_v15  ;;  %v979_v27 = vadd.f32 %v2985_v35, %v954_v30 }
 0x137   : > { %v996_v19 = vmax.f32 %v980_v57, 0.0  ;;  %v940_v17 = vpop.f32.mrf.mxu1 }
 0x138   : > { %v646_v25 = vpop.f32.mrf.mxu0  ;;  %v995_v26 = vmax.f32 %v979_v27, 0.0  ;;  %v955_v34 = vadd.f32 %v940_v17, %v644_v23 }
 0x139   : > { %1012 = vst [vmem:[%s2990_s18 + $0xc0] sm:$0xff] %v996_v19  ;;  %v982_v1 = vadd.f32 %v2981_v18, %v646_v25  ;;  %v3030_v29 = vpop.f32.mrf.mxu1 }
 0x13a   : > { %v648_v4 = vpop.f32.mrf.mxu0  ;;  %1011 = vst [vmem:[%s2990_s18 + $0xa8] sm:$0xff] %v995_v26  ;;  %v981_v12 = vadd.f32 %v2985_v35, %v955_v34 }
 0x13b   : > { %v998_v32 = vmax.f32 %v982_v1, 0.0  ;;  %v944_v33 = vpop.f32.mrf.mxu1 }
 0x13c   : > { %v997_v36 = vmax.f32 %v981_v12, 0.0  ;;  %v956_v42 = vadd.f32 %v944_v33, %v648_v4 }
 0x13d   : > { %1014 = vst [vmem:[%s2990_s18 + $0xe0] sm:$0xff] %v998_v32  ;;  %v3037_v54 = vpop.f32.mrf.mxu1 }
 0x13e   : > { %1013 = vst [vmem:[%s2990_s18 + $0xc8] sm:$0xff] %v997_v36  ;;  %v983_v39 = vadd.f32 %v2985_v35, %v956_v42 }
 0x140   : > { %v999_v40 = vmax.f32 %v983_v39, 0.0 }
 0x142   : > { %1015 = vst [vmem:[%s2990_s18 + $0xe8] sm:$0xff] %v999_v40 }
 0x15c   : > { %v1372_v41 = vpop.f32.mrf.mxu0 }
 0x15d   : > { %v1678_v50 = vpop.f32.mrf.mxu1 }
 0x15e   : > { %v1942_v37 = vadd.f32 %v1678_v50, %v1372_v41  ;;  %v1374_v28 = vpop.f32.mrf.mxu0 }
 0x15f   : > { %v3039_v46 = vpop.f32.mrf.mxu1  ;;  %v1950_v41 = vadd.f32 %v1374_v28, %v2992_v3 }
 0x160   : > { %v1974_v48 = vadd.f32 %v1942_v37, %v2981_v18  ;;  %v1376_v47 = vpop.f32.mrf.mxu0 }
 0x161   : > { %v1682_v38 = vpop.f32.mrf.mxu1 }
 0x162   : > { %v1990_v5 = vmax.f32 %v1974_v48, 0.0  ;;  %v1943_v49 = vadd.f32 %v1682_v38, %v1376_v47  ;;  %v1378_v52 = vpop.f32.mrf.mxu0 }
 0x163   : > { %v3042_v53 = vpop.f32.mrf.mxu1 }
 0x164   : > { %2292 = vst [vmem:[%s2990_s18 + $0x10] sm:$0xff] %v1990_v5  ;;  %v1976_v56 = vadd.f32 %v1943_v49, %v2981_v18  ;;  %v1382_v51 = vpop.f32.mrf.mxu0  ;;  %v1951_v5 = vadd.f32 %v1378_v52, %v3004_v55 }
 0x165   : > { %v1688_v58 = vpop.f32.mrf.mxu1 }
 0x166   : > { %v1992_v59 = vmax.f32 %v1976_v56, 0.0  ;;  %v1944_v60 = vadd.f32 %v1688_v58, %v1382_v51  ;;  %v3046_v61 = vpop.f32.mrf.mxu0  ;;  %v1958_v58 = vadd.f32 %v1950_v41, %v3039_v46 }
 0x167   : > { %v3048_v21 = vpop.f32.mrf.mxu1 }
 0x168   : > { %2294 = vst [vmem:[%s2990_s18 + $0x30] sm:$0xff] %v1992_v59  ;;  %v1978_v63 = vadd.f32 %v1944_v60, %v2981_v18  ;;  %v1386_v0 = vpop.f32.mrf.mxu0 }
 0x169   : > { %v1692_v7 = vpop.f32.mrf.mxu1 }
 0x16a   : > { %v1994_v44 = vmax.f32 %v1978_v63, 0.0  ;;  %v1945_v2 = vadd.f32 %v1692_v7, %v1386_v0  ;;  %v3052_v6 = vpop.f32.mrf.mxu0  ;;  %v1952_v7 = vadd.f32 %v3046_v61, %v3008_v62 }
 0x16b   : > { %v3054_v8 = vpop.f32.mrf.mxu1 }
 0x16c   : > { %2296 = vst [vmem:[%s2990_s18 + $0x50] sm:$0xff] %v1994_v44  ;;  %v1980_v10 = vadd.f32 %v1945_v2, %v2981_v18  ;;  %v1392_v11 = vpop.f32.mrf.mxu0  ;;  %v1960_v62 = vadd.f32 %v1952_v7, %v3048_v21 }
 0x16d   : > { %v1698_v31 = vpop.f32.mrf.mxu1 }
 0x16e   : > { %v1996_v13 = vmax.f32 %v1980_v10, 0.0  ;;  %v1946_v14 = vadd.f32 %v1698_v31, %v1392_v11  ;;  %v1394_v16 = vpop.f32.mrf.mxu0 }
 0x16f   : > { %v1700_v45 = vpop.f32.mrf.mxu1  ;;  %v1954_v50 = vadd.f32 %v1394_v16, %v3019_v20 }
 0x170   : > { %2298 = vst [vmem:[%s2990_s18 + $0x70] sm:$0xff] %v1996_v13  ;;  %v1982_v57 = vadd.f32 %v1946_v14, %v2981_v18  ;;  %v1396_v23 = vpop.f32.mrf.mxu0 }
 0x171   : > { %v1702_v43 = vpop.f32.mrf.mxu1  ;;  %v1962_v59 = vadd.f32 %v1954_v50, %v1700_v45 }
 0x172   : > { %v1998_v19 = vmax.f32 %v1982_v57, 0.0  ;;  %v1947_v24 = vadd.f32 %v1702_v43, %v1396_v23  ;;  %v1398_v25 = vpop.f32.mrf.mxu0 }
 0x173   : > { %v1704_v15 = vpop.f32.mrf.mxu1  ;;  %v1955_v49 = vadd.f32 %v1398_v25, %v3025_v22 }
 0x174   : > { %2300 = vst [vmem:[%s2990_s18 + $0x90] sm:$0xff] %v1998_v19  ;;  %v1984_v30 = vadd.f32 %v1947_v24, %v2981_v18  ;;  %v1402_v1 = vpop.f32.mrf.mxu0 }
 0x175   : > { %v1708_v27 = vpop.f32.mrf.mxu1  ;;  %v1963_v55 = vadd.f32 %v1955_v49, %v1704_v15 }
 0x176   : > { %v2000_v32 = vmax.f32 %v1984_v30, 0.0  ;;  %v1948_v17 = vadd.f32 %v1708_v27, %v1402_v1  ;;  %v1404_v26 = vpop.f32.mrf.mxu0 }
 0x177   : > { %v1710_v34 = vpop.f32.mrf.mxu1  ;;  %v1956_v22 = vadd.f32 %v1404_v26, %v3030_v29  ;;  %v1953_v29 = vadd.f32 %v3052_v6, %v3013_v9 }
 0x178   : > { %2302 = vst [vmem:[%s2990_s18 + $0xb0] sm:$0xff] %v2000_v32  ;;  %v1986_v4 = vadd.f32 %v1948_v17, %v2981_v18  ;;  %v1406_v12 = vpop.f32.mrf.mxu0 }
 0x179   : > { %v1712_v33 = vpop.f32.mrf.mxu1  ;;  %v1964_v61 = vadd.f32 %v1956_v22, %v1710_v34 }
 0x17a   : > { %v2002_v36 = vmax.f32 %v1986_v4, 0.0  ;;  %v1949_v42 = vadd.f32 %v1712_v33, %v1406_v12  ;;  %v1408_v39 = vpop.f32.mrf.mxu0 }
 0x17b   : > { %v1714_v40 = vpop.f32.mrf.mxu1  ;;  %v1957_v57 = vadd.f32 %v1408_v39, %v3037_v54  ;;  %v1961_v54 = vadd.f32 %v1953_v29, %v3054_v8 }
 0x17c   : > { %2304 = vst [vmem:[%s2990_s18 + $0xd0] sm:$0xff] %v2002_v36  ;;  %v1988_v37 = vadd.f32 %v1949_v42, %v2981_v18  ;;  %v2327_v48 = vpop.f32.mrf.mxu0  ;;  %v1959_v18 = vadd.f32 %v1951_v5, %v3042_v53 }
 0x17d   : > { %v2339_v47 = vpop.f32.mrf.mxu1  ;;  %v1965_v32 = vadd.f32 %v1957_v57, %v1714_v40 }
 0x17e   : > { %v2004_v38 = vmax.f32 %v1988_v37, 0.0  ;;  %v2328_v56 = vpop.f32.mrf.mxu0 }
 0x17f   : > { %v2340_v51 = vpop.f32.mrf.mxu1  ;;  %v2329_v60 = vadd.f32 %v2328_v56, %v2327_v48 }
 0x180   : > { %2306 = vst [vmem:[%s2990_s18 + $0xf0] sm:$0xff] %v2004_v38  ;;  %v2341_v3 = vadd.f32 %v2340_v51, %v2339_v47  ;;  %v2330_v28 = vpop.f32.mrf.mxu0 }
 0x181   : > { %v2342_v20 = vpop.f32.mrf.mxu1  ;;  %v1966_v63 = vadd.f32 %v2329_v60, %v1958_v58 }
 0x182   : > { %v1970_v0 = vadd.f32 %v2341_v3, %v1962_v59  ;;  %v2331_v52 = vpop.f32.mrf.mxu0 }
 0x183   : > { %v2343_v44 = vpop.f32.mrf.mxu1  ;;  %v1975_v46 = vadd.f32 %v1966_v63, %v2985_v35  ;;  %v2332_v10 = vadd.f32 %v2331_v52, %v2330_v28 }
 0x184   : > { %v1983_v2 = vadd.f32 %v1970_v0, %v2985_v35  ;;  %v2344_v11 = vadd.f32 %v2343_v44, %v2342_v20  ;;  %v2333_v31 = vpop.f32.mrf.mxu0 }
 0x185   : > { %v2345_v13 = vpop.f32.mrf.mxu1  ;;  %v1991_v14 = vmax.f32 %v1975_v46, 0.0  ;;  %v1967_v16 = vadd.f32 %v2332_v10, %v1959_v18 }
 0x186   : > { %v1999_v53 = vmax.f32 %v1983_v2, 0.0  ;;  %v1971_v45 = vadd.f32 %v2344_v11, %v1963_v55  ;;  %v2334_v23 = vpop.f32.mrf.mxu0 }
 0x187   : > { %v2346_v43 = vpop.f32.mrf.mxu1  ;;  %2293 = vst [vmem:[%s2990_s18 + $0x18] sm:$0xff] %v1991_v14  ;;  %v1977_v19 = vadd.f32 %v1967_v16, %v2985_v35  ;;  %v2335_v25 = vadd.f32 %v2334_v23, %v2333_v31 }
 0x188   : > { %2301 = vst [vmem:[%s2990_s18 + $0x98] sm:$0xff] %v1999_v53  ;;  %v1985_v24 = vadd.f32 %v1971_v45, %v2985_v35  ;;  %v2347_v15 = vadd.f32 %v2346_v43, %v2345_v13  ;;  %v2336_v30 = vpop.f32.mrf.mxu0 }
 0x189   : > { %v2348_v21 = vpop.f32.mrf.mxu1  ;;  %v1993_v1 = vmax.f32 %v1977_v19, 0.0  ;;  %v1968_v9 = vadd.f32 %v2335_v25, %v1960_v62 }
 0x18a   : > { %v2001_v27 = vmax.f32 %v1985_v24, 0.0  ;;  %v1972_v6 = vadd.f32 %v2347_v15, %v1964_v61  ;;  %v2337_v17 = vpop.f32.mrf.mxu0 }
 0x18b   : > { %v2349_v26 = vpop.f32.mrf.mxu1  ;;  %2295 = vst [vmem:[%s2990_s18 + $0x38] sm:$0xff] %v1993_v1  ;;  %v1979_v34 = vadd.f32 %v1968_v9, %v2985_v35  ;;  %v2338_v12 = vadd.f32 %v2337_v17, %v2336_v30 }
 0x18c   : > { %2303 = vst [vmem:[%s2990_s18 + $0xb8] sm:$0xff] %v2001_v27  ;;  %v1987_v4 = vadd.f32 %v1972_v6, %v2985_v35  ;;  %v2350_v33 = vadd.f32 %v2349_v26, %v2348_v21 }
 0x18d   : > { %v1995_v36 = vmax.f32 %v1979_v34, 0.0  ;;  %v1969_v39 = vadd.f32 %v2338_v12, %v1961_v54 }
 0x18e   : > { %v2003_v42 = vmax.f32 %v1987_v4, 0.0  ;;  %v1973_v41 = vadd.f32 %v2350_v33, %v1965_v32 }
 0x18f   : > { %2297 = vst [vmem:[%s2990_s18 + $0x58] sm:$0xff] %v1995_v36  ;;  %v1981_v8 = vadd.f32 %v1969_v39, %v2985_v35 }
 0x190   : > { %2305 = vst [vmem:[%s2990_s18 + $0xd8] sm:$0xff] %v2003_v42  ;;  %v1989_v40 = vadd.f32 %v1973_v41, %v2985_v35 }
 0x191   : > { %v1997_v50 = vmax.f32 %v1981_v8, 0.0 }
 0x192   : > { %v2005_v37 = vmax.f32 %v1989_v40, 0.0 }
 0x193   : > { %2299 = vst [vmem:[%s2990_s18 + $0x78] sm:$0xff] %v1997_v50 }
 0x194   : > { %2307 = vst [vmem:[%s2990_s18 + $0xf8] sm:$0xff] %v2005_v37 }
 0x195 PF: > { %s15_s15 = sadd.s32 1, %s2649_s15  }
 0x196   : > { %p12_p1 = scmp.ge.s32.totalorder %s15_s15, 4  }
 0x198   :  { %14 = sbr.rel (!%p12_p1) target bundleno = 1 (0x1), region = 76 }
 0x19d   :  { %2044 = vsyncpa [#allocation3], 1 }
 0x19e   :  { %2046 = vsyncpa [#allocation3 + $0x1], 1 }

</bundles_post_ra>
